<compile_context>
chip_gen: v7x
topology: tpu7x:2x2x1
jax: 0.10.0
libtpu: 0.0.40
codegen_flags: <defaults>
</compile_context>

<pallas_src>
import numpy as np
import jax
import jax.numpy as jnp
from jax.experimental import pallas as pl
from jax.experimental.pallas import tpu as pltpu

EPS = 1e-5
MOMENTUM = 0.1
LANE = 128


def _bn_flow_kernel(x_ref, params_ref, out_ref, stats_ref):
    """One feature tile of training-mode BatchNormFlow.forward.

    x_ref      : (N, TF)  inputs
    params_ref : (4, TF)  rows = [unconstrained_weight, bias, running_mean, running_var]
    out_ref    : (N, TF)  normalized outputs
    stats_ref  : (3, TF)  rows = [per-feature logabsdet terms,
                                  new running_mean, new running_var]
    """
    x = x_ref[...].astype(jnp.float32)                        # (N, TF)
    n = x.shape[0]

    uw = params_ref[0:1, :]                                   # (1, TF)
    b = params_ref[1:2, :]
    rm = params_ref[2:3, :]
    rv = params_ref[3:4, :]

    # Batch statistics over the sublane (batch) axis.
    # torch.var is unbiased (correction = 1); n == 1 gives NaN, same as torch.
    mean = jnp.mean(x, axis=0, keepdims=True)                 # (1, TF)
    diff = x - mean
    var = jnp.sum(diff * diff, axis=0, keepdims=True) * (1.0 / (n - 1))

    # weight = softplus(unconstrained_weight) + eps   (EUP work on a (1,TF) row)
    weight = jax.nn.softplus(uw) + EPS                        # (1, TF)
    inv_std = jax.lax.rsqrt(var + EPS)

    # Fold the normalize into a per-feature affine: out = x * scale + shift.
    scale = weight * inv_std                                  # (1, TF)
    shift = b - scale * mean                                  # (1, TF)
    out_ref[...] = (x * scale + shift).astype(out_ref.dtype)

    # Per-feature logabsdet contributions + running-stat updates, one store.
    lad_row = jnp.log(weight) - 0.5 * jnp.log(var + EPS)      # (1, TF)
    rm_new = (1.0 - MOMENTUM) * rm + MOMENTUM * mean
    rv_new = (1.0 - MOMENTUM) * rv + MOMENTUM * var
    stats_ref[...] = jnp.concatenate([lad_row, rm_new, rv_new], axis=0)


def _round_up(x, m):
    return (x + m - 1) // m * m


def batch_norm_flow_forward(x, unconstrained_weight, bias,
                            running_mean, running_var):
    """Training-mode forward.

    Returns (outputs (N,F), logabsdet (N,1), new_running_mean (F,),
             new_running_var (F,)).
    """
    N, F = x.shape

    # Pad features to a multiple of 128 lanes; pick the largest power-of-two
    # tile (<= 1024 lanes) that divides the padded width, then shrink it if
    # the double-buffered (N, TF) in/out blocks would get too big for VMEM.
    F_pad = _round_up(F, LANE)
    m = F_pad // LANE
    tf_mult = 1
    while tf_mult < 8 and m % (tf_mult * 2) == 0:
        tf_mult *= 2
    TF = tf_mult * LANE
    # 2 buffers x (x block + out block) x 4B; keep under ~8 MiB so the param
    # rows and pipeline headroom fit comfortably on every generation
    # (v7x has only 64 MiB of VMEM per TensorCore).
    while TF > LANE and 4 * N * TF * 4 > (8 << 20):
        TF //= 2

    pad_f = F_pad - F
    x_p = jnp.pad(x, ((0, 0), (0, pad_f))) if pad_f else x

    params = jnp.stack([unconstrained_weight, bias,
                        running_mean, running_var]).astype(jnp.float32)  # (4, F)
    if pad_f:
        params = jnp.pad(params, ((0, 0), (0, pad_f)))

    n_tiles = F_pad // TF
    mat_spec = pl.BlockSpec((N, TF), lambda j: (0, j))
    par_spec = pl.BlockSpec((4, TF), lambda j: (0, j))
    sta_spec = pl.BlockSpec((3, TF), lambda j: (0, j))

    out_p, stats_p = pl.pallas_call(
        _bn_flow_kernel,
        out_shape=(
            jax.ShapeDtypeStruct((N, F_pad), x.dtype),        # outputs
            jax.ShapeDtypeStruct((3, F_pad), jnp.float32),    # lad / rm_new / rv_new
        ),
        grid_spec=pltpu.PrefetchScalarGridSpec(
            num_scalar_prefetch=0,
            grid=(n_tiles,),
            in_specs=[mat_spec, par_spec],
            out_specs=(mat_spec, sta_spec),
        ),
        compiler_params=pltpu.CompilerParams(
            dimension_semantics=("parallel",),       # independent feature tiles
            vmem_limit_bytes=32 * 1024 * 1024,
        ),
    )(x_p, params)

    outputs = out_p[:, :F]
    logabsdet = jnp.sum(stats_p[0, :F]) * jnp.ones((N, 1), jnp.float32)
    rm_new = stats_p[1, :F]
    rv_new = stats_p[2, :F]
    return outputs, logabsdet, rm_new, rv_new


def _reference(x, uw, bias, rm, rv):
    """Pure-JAX reference mirroring the PyTorch forward (training mode)."""
    mean = jnp.mean(x, axis=0)
    var = jnp.var(x, axis=0, ddof=1)
    weight = jax.nn.softplus(uw) + EPS
    outputs = weight * ((x - mean) / jnp.sqrt(var + EPS)) + bias
    lad = jnp.sum(jnp.log(weight) - 0.5 * jnp.log(var + EPS)) * jnp.ones((x.shape[0], 1))
    rm_new = rm * (1 - MOMENTUM) + mean * MOMENTUM
    rv_new = rv * (1 - MOMENTUM) + var * MOMENTUM
    return outputs, lad, rm_new, rv_new


if __name__ == "__main__":
    features = 32
    batch = 8

    # deterministic parameter init, same as the module's __init__
    constant = float(np.log(np.exp(1.0 - EPS) - 1.0))
    unconstrained_weight = constant * jnp.ones((features,), jnp.float32)
    bias = jnp.zeros((features,), jnp.float32)
    running_mean = jnp.zeros((features,), jnp.float32)
    running_var = jnp.zeros((features,), jnp.float32)

    key = jax.random.PRNGKey(0)
    x = jax.random.normal(key, (batch, features), jnp.float32)

    outs = batch_norm_flow_forward(x, unconstrained_weight, bias,
                                   running_mean, running_var)
    outs = jax.block_until_ready(outs)
    outputs, logabsdet, rm_new, rv_new = outs

    ref = _reference(x, unconstrained_weight, bias, running_mean, running_var)
    np.testing.assert_allclose(np.asarray(outputs), np.asarray(ref[0]), rtol=1e-5, atol=1e-5)
    np.testing.assert_allclose(np.asarray(logabsdet), np.asarray(ref[1]), rtol=1e-5, atol=1e-5)
    np.testing.assert_allclose(np.asarray(rm_new), np.asarray(ref[2]), rtol=1e-5, atol=1e-5)
    np.testing.assert_allclose(np.asarray(rv_new), np.asarray(ref[3]), rtol=1e-5, atol=1e-5)

    print("KERNEL_OK")
</pallas_src>

<mosaic_0001>
module attributes {stable_mosaic.version = 11 : i64} {
  func.func @_bn_flow_kernel(%arg0: i32, %arg1: memref<8x128xf32, #tpu.memory_space<vmem>>, %arg2: memref<4x128xf32, #tpu.memory_space<vmem>>, %arg3: memref<8x128xf32, #tpu.memory_space<vmem>>, %arg4: memref<3x128xf32, #tpu.memory_space<vmem>>) attributes {dimension_semantics = [#tpu.dimension_semantics<parallel>], iteration_bounds = array<i64: 1>, scalar_prefetch = 0 : i64, scratch_operands = 0 : i64, tpu.core_type = #tpu.core_type<tc>, window_params = [{transform_indices = @transform_0, window_bounds = array<i64: 8, 128>}, {transform_indices = @transform_1, window_bounds = array<i64: 4, 128>}, {transform_indices = @transform_2, window_bounds = array<i64: 8, 128>}, {transform_indices = @transform_3, window_bounds = array<i64: 3, 128>}]} {
    %c0 = arith.constant 0 : index
    %c0_0 = arith.constant 0 : index
    %0 = vector.load %arg1[%c0, %c0_0] : memref<8x128xf32, #tpu.memory_space<vmem>>, vector<8x128xf32>
    %c0_1 = arith.constant 0 : index
    %c0_2 = arith.constant 0 : index
    %1 = vector.load %arg2[%c0_1, %c0_2] : memref<4x128xf32, #tpu.memory_space<vmem>>, vector<1x128xf32>
    %c1 = arith.constant 1 : index
    %c0_3 = arith.constant 0 : index
    %2 = vector.load %arg2[%c1, %c0_3] : memref<4x128xf32, #tpu.memory_space<vmem>>, vector<1x128xf32>
    %c2 = arith.constant 2 : index
    %c0_4 = arith.constant 0 : index
    %3 = vector.load %arg2[%c2, %c0_4] : memref<4x128xf32, #tpu.memory_space<vmem>>, vector<1x128xf32>
    %c3 = arith.constant 3 : index
    %c0_5 = arith.constant 0 : index
    %4 = vector.load %arg2[%c3, %c0_5] : memref<4x128xf32, #tpu.memory_space<vmem>>, vector<1x128xf32>
    %cst = arith.constant dense<0.000000e+00> : vector<128xf32>
    %5 = vector.multi_reduction <add>, %0, %cst [0] : vector<8x128xf32> to vector<128xf32>
    %6 = vector.shape_cast %5 : vector<128xf32> to vector<1x128xf32>
    %cst_6 = arith.constant 8.000000e+00 : f32
    %7 = vector.broadcast %cst_6 : f32 to vector<1x128xf32>
    %8 = arith.divf %6, %7 : vector<1x128xf32>
    %9 = vector.broadcast %8 : vector<1x128xf32> to vector<8x128xf32>
    %10 = arith.subf %0, %9 : vector<8x128xf32>
    %11 = arith.mulf %10, %10 : vector<8x128xf32>
    %cst_7 = arith.constant dense<0.000000e+00> : vector<128xf32>
    %12 = vector.multi_reduction <add>, %11, %cst_7 [0] : vector<8x128xf32> to vector<128xf32>
    %13 = vector.shape_cast %12 : vector<128xf32> to vector<1x128xf32>
    %cst_8 = arith.constant 0.142857149 : f32
    %14 = vector.broadcast %cst_8 : f32 to vector<1x128xf32>
    %15 = arith.mulf %13, %14 : vector<1x128xf32>
    %cst_9 = arith.constant 0.000000e+00 : f32
    %16 = vector.broadcast %cst_9 : f32 to vector<1x128xf32>
    %17 = arith.maximumf %1, %16 : vector<1x128xf32>
    %18 = vector.broadcast %cst_9 : f32 to vector<1x128xf32>
    %19 = arith.subf %1, %18 : vector<1x128xf32>
    %20 = arith.cmpf one, %19, %19 : vector<1x128xf32>
    %21 = vector.broadcast %cst_9 : f32 to vector<1x128xf32>
    %22 = arith.addf %1, %21 : vector<1x128xf32>
    %23 = math.absf %19 : vector<1x128xf32>
    %cst_10 = arith.constant 0.000000e+00 : f32
    %24 = vector.broadcast %cst_10 : f32 to vector<1x128xf32>
    %25 = arith.subf %24, %23 : vector<1x128xf32>
    %26 = math.exp %25 : vector<1x128xf32>
    %27 = math.log1p %26 : vector<1x128xf32>
    %28 = arith.addf %17, %27 : vector<1x128xf32>
    %29 = arith.select %20, %22, %28 : vector<1x128xi1>, vector<1x128xf32>
    %cst_11 = arith.constant 9.99999974E-6 : f32
    %30 = vector.broadcast %cst_11 : f32 to vector<1x128xf32>
    %31 = arith.addf %29, %30 : vector<1x128xf32>
    %cst_12 = arith.constant 9.99999974E-6 : f32
    %32 = vector.broadcast %cst_12 : f32 to vector<1x128xf32>
    %33 = arith.addf %15, %32 : vector<1x128xf32>
    %34 = math.rsqrt %33 : vector<1x128xf32>
    %35 = arith.mulf %31, %34 : vector<1x128xf32>
    %36 = arith.mulf %35, %8 : vector<1x128xf32>
    %37 = arith.subf %2, %36 : vector<1x128xf32>
    %38 = vector.broadcast %35 : vector<1x128xf32> to vector<8x128xf32>
    %39 = arith.mulf %0, %38 : vector<8x128xf32>
    %40 = vector.broadcast %37 : vector<1x128xf32> to vector<8x128xf32>
    %41 = arith.addf %39, %40 : vector<8x128xf32>
    %c0_13 = arith.constant 0 : index
    %c0_14 = arith.constant 0 : index
    %42 = vector.load %arg3[%c0_13, %c0_14] : memref<8x128xf32, #tpu.memory_space<vmem>>, vector<8x128xf32>
    tpu.vector_store %arg3[%c0_13, %c0_14], %41 {strides = array<i32>} : memref<8x128xf32, #tpu.memory_space<vmem>>, vector<8x128xf32>,
    %43 = math.log %31 : vector<1x128xf32>
    %cst_15 = arith.constant 9.99999974E-6 : f32
    %44 = vector.broadcast %cst_15 : f32 to vector<1x128xf32>
    %45 = arith.addf %15, %44 : vector<1x128xf32>
    %46 = math.log %45 : vector<1x128xf32>
    %cst_16 = arith.constant 5.000000e-01 : f32
    %47 = vector.broadcast %cst_16 : f32 to vector<1x128xf32>
    %48 = arith.mulf %47, %46 : vector<1x128xf32>
    %49 = arith.subf %43, %48 : vector<1x128xf32>
    %cst_17 = arith.constant 0.899999976 : f32
    %50 = vector.broadcast %cst_17 : f32 to vector<1x128xf32>
    %51 = arith.mulf %50, %3 : vector<1x128xf32>
    %cst_18 = arith.constant 1.000000e-01 : f32
    %52 = vector.broadcast %cst_18 : f32 to vector<1x128xf32>
    %53 = arith.mulf %52, %8 : vector<1x128xf32>
    %54 = arith.addf %51, %53 : vector<1x128xf32>
    %cst_19 = arith.constant 0.899999976 : f32
    %55 = vector.broadcast %cst_19 : f32 to vector<1x128xf32>
    %56 = arith.mulf %55, %4 : vector<1x128xf32>
    %cst_20 = arith.constant 1.000000e-01 : f32
    %57 = vector.broadcast %cst_20 : f32 to vector<1x128xf32>
    %58 = arith.mulf %57, %15 : vector<1x128xf32>
    %59 = arith.addf %56, %58 : vector<1x128xf32>
    %60 = tpu.concatenate %49, %54, %59 in 0 : vector<1x128xf32>, vector<1x128xf32>, vector<1x128xf32> -> vector<3x128xf32>
    %c0_21 = arith.constant 0 : index
    %c0_22 = arith.constant 0 : index
    %61 = vector.load %arg4[%c0_21, %c0_22] : memref<3x128xf32, #tpu.memory_space<vmem>>, vector<3x128xf32>
    tpu.vector_store %arg4[%c0_21, %c0_22], %60 {strides = array<i32>} : memref<3x128xf32, #tpu.memory_space<vmem>>, vector<3x128xf32>,
    return
  }
  func.func @transform_0(%arg0: i32) -> (i32, i32) {
    %c0_i32 = arith.constant 0 : i32
    %c0_i32_0 = arith.constant 0 : i32
    return %c0_i32, %arg0 : i32, i32
  }
  func.func @transform_1(%arg0: i32) -> (i32, i32) {
    %c0_i32 = arith.constant 0 : i32
    %c0_i32_0 = arith.constant 0 : i32
    return %c0_i32, %arg0 : i32, i32
  }
  func.func @transform_2(%arg0: i32) -> (i32, i32) {
    %c0_i32 = arith.constant 0 : i32
    %c0_i32_0 = arith.constant 0 : i32
    return %c0_i32, %arg0 : i32, i32
  }
  func.func @transform_3(%arg0: i32) -> (i32, i32) {
    %c0_i32 = arith.constant 0 : i32
    %c0_i32_0 = arith.constant 0 : i32
    return %c0_i32, %arg0 : i32, i32
  }
}

</mosaic_0001>

<bundles_post_ra>
// kernel: tpu_custom_call.1
= control target key start
LH: loop header
LB: loop body
LE: loop exit
PB: predicated region body
PF: predicated region fallthrough
CT: control target
= control target key end

     0   :  { %9 = vsyncpa [#allocation3], 0  ;;  %s337_s0 = inlined_call_operand.hbm [shape: f32[8,128], index: 0, kind: input, shape index: {}]   ;;  %s338_s1 = inlined_call_operand.hbm [shape: f32[4,128], index: 1, kind: input, shape index: {}]   ;;  %s339_s2 = inlined_call_operand.hbm [shape: f32[8,128], index: 2, kind: output, shape index: {0}]   ;;  %s340_s3 = inlined_call_operand.hbm [shape: f32[3,128], index: 3, kind: output, shape index: {1}]  }
   0x1   :  { %10 = vsyncpa [#allocation6], 0 }
   0x2   :  { %11 = vsyncpa [#allocation4], 0 }
   0x3   :  { %12 = vsyncpa [#allocation9], 0  ;;  %s259_s12 = smov [#allocation2]   ;;  %s260_s14 = smov [#allocation5]  }
   0x4   :  { %s19_s13 = sshll.u32 %s259_s12, 4  ;;  %s29_s15 = sshll.u32 %s260_s14, 4  ;;  %s20_s13 = int_to_ptr.vmem [resolvable:$true] %s19_s13  ;;  %s30_s15 = int_to_ptr.vmem [resolvable:$true] %s29_s15 }
   0x5   :  { %s163_s18 = scalar_lea.hbm %s337_s0, 128 }
   0x6   :  { %p164_p0 = scmp.ne.s32.totalorder %s337_s0, %s163_s18  ;;  %p167_p1 = scmp.lt.u32.totalorder %s163_s18, %s337_s0 }
   0x8   :  { %p169_p2 = pnand %p167_p1, %p164_p0 }
   0xa   :  { %172 = shalt.err (!%p169_p2)
}
   0xb   :  { %s173_s23 = scalar_lea.vmem %s20_s13, 128  ;;  %p178_p4 = scmp.lt.s32.totalorder %s20_s13, %s20_s13 }
   0xc   :  { %p174_p3 = scmp.ne.s32.totalorder %s20_s13, %s173_s23  ;;  %p179_p5 = scmp.lt.s32.totalorder %s173_s23, %s173_s23 }
   0xe   :  { %p180_p6 = por %p179_p5, %p178_p4 }
  0x10   :  { %p181_p7 = pnand %p180_p6, %p174_p3 }
  0x12   :  { %184 = shalt.err (!%p181_p7)
}
  0x13   :  { %22 = dma.hbm_to_vmem [thread:$0]  %s337_s0, 128, %s20_s13, [#allocation3]  }
  0x14   :  { %s185_s28 = scalar_lea.hbm %s338_s1, 64 }
  0x15   :  { %p186_p8 = scmp.ne.s32.totalorder %s338_s1, %s185_s28  ;;  %p189_p9 = scmp.lt.u32.totalorder %s185_s28, %s338_s1 }
  0x17   :  { %p191_p10 = pnand %p189_p9, %p186_p8 }
  0x19   :  { %194 = shalt.err (!%p191_p10)
}
  0x1a   :  { %s195_s6 = scalar_lea.vmem %s30_s15, 64  ;;  %p200_p12 = scmp.lt.s32.totalorder %s30_s15, %s30_s15 }
  0x1b   :  { %p196_p11 = scmp.ne.s32.totalorder %s30_s15, %s195_s6  ;;  %p201_p13 = scmp.lt.s32.totalorder %s195_s6, %s195_s6 }
  0x1d   :  { %p202_p0 = por %p201_p13, %p200_p12 }
  0x1f   :  { %p203_p1 = pnand %p202_p0, %p196_p11 }
  0x21   :  { %206 = shalt.err (!%p203_p1)
}
  0x22   :  { %32 = dma.hbm_to_vmem [thread:$0]  %s338_s1, 64, %s30_s15, [#allocation6]  }
  0x23   :  { %251 = dma.done.wait [#allocation3], 128  }
  0x24   :  { %252 = vsyncadd [#allocation3], 4294967168 }
  0x25   :  { %253 = dma.done.wait [#allocation6], 64  }
  0x26   :  { %254 = vsyncadd [#allocation6], 4294967232  ;;  %v307_v0 = vld [vmem:[#allocation2] sm:$0xff]  ;;  %v40_v1 = vld [vmem:[#allocation5] sm:$0x1]  ;;  %v85_v34 = vlaneseq  ;;  %vm114_vm2 = vcmask 1040384  }
  0x27   :  { %v44_v2 = vrot.slane %v307_v0, 4  ;;  %v64_v3 = vand.u32 2147483647, %v40_v1  ;;  %v61_v27 = vmax.f32 %v40_v1, 0.0  ;;  %vm62_vm1 = vcmp.ne.f32.partialorder %v40_v1, %v40_v1  ;;  %v42_v36 = vld [vmem:[#allocation5 + $0x2] sm:$0x1] }
  0x28   :  { %v86_v37 = vshrl.u32 %v85_v34, 7  ;;  %v43_v38 = vld [vmem:[#allocation5 + $0x3] sm:$0x1]  ;;  %v102_v39 = vmul.f32 0.9, %v42_v36  ;;  %s261_s1 = smov [#allocation7]  }
  0x29   :  { %v45_v4 = vadd.f32 %v44_v2, %v307_v0  ;;  %v65_v5 = vsub.f32 0.0, %v64_v3  ;;  %v105_v41 = vmul.f32 0.9, %v43_v38  ;;  %v41_v48 = vld [vmem:[#allocation5 + $0x1] sm:$0x1]  ;;  %s125_s8 = sshll.u32 %s261_s1, 4  ;;  %s126_s8 = int_to_ptr.vmem [resolvable:$true] %s125_s8 }
  0x2a   :  { %v87_v43 = vsub.s32 0, %v86_v37  ;;  %vm116_vm3 = vcmask 1041408   ;;  %s262_s9 = smov [#allocation8]   ;;  %s207_s11 = scalar_lea.vmem %s126_s8, 128 }
  0x2b   :  { %v46_v6 = vrot.slane %v45_v4, 2  ;;  %v66_v7 = vmul.f32 1.442695, %v65_v5  ;;  %s135_s10 = sshll.u32 %s262_s9, 4  ;;  %p208_p2 = scmp.ne.s32.totalorder %s126_s8, %s207_s11  ;;  %s136_s10 = int_to_ptr.vmem [resolvable:$true] %s135_s10 }
  0x2c   :  { %p212_p3 = scmp.lt.s32.totalorder %s126_s8, %s126_s8  ;;  %p213_p4 = scmp.lt.s32.totalorder %s207_s11, %s207_s11 }
  0x2d   :  { %v47_v8 = vadd.f32 %v46_v6, %v45_v4  ;;  %153 = vpow2.f32 %v66_v7 }
  0x2e   :  { %p214_p5 = por %p213_p4, %p212_p3 }
  0x2f   :  { %v48_v9 = vrot.slane %v47_v8, 1 }
  0x30   :  { %p215_p6 = pnand %p214_p5, %p208_p2 }
  0x31   :  { %v49_v10 = vadd.f32 %v48_v9, %v47_v8 }
  0x33   :  { %v51_v11 = vmul.f32 0.125, %v49_v10 }
  0x35   :  { %v52_v12 = vsub.f32 %v307_v0, %v51_v11  ;;  %v103_v40 = vmul.f32 0.1, %v51_v11 }
  0x37   :  { %v154_v13 = vpop.eup %153  ;;  %v53_v14 = vmul.f32 %v52_v12, %v52_v12  ;;  %v104_v47 = vadd.f32 %v103_v40, %v102_v39 }
  0x38   :  { %v68_v15 = vadd.f32 1.0, %v154_v13  ;;  %v71_v18 = vmul.f32 -0.5, %v154_v13  ;;  %v74_v22 = vand.u32 2147483647, %v154_v13 }
  0x39   :  { %v54_v16 = vrot.slane %v53_v14, 4  ;;  %v109_v58 = vrot.slane %v104_v47, 7 }
  0x3a   :  { %155 = vlog2.f32 %v68_v15  ;;  %v72_v21 = vadd.f32 1.0, %v71_v18  ;;  %vm75_vm0 = vcmp.lt.f32.partialorder %v74_v22, 0.0004427343 }
  0x3b   :  { %v55_v17 = vadd.f32 %v54_v16, %v53_v14 }
  0x3c   :  { %v73_v25 = vmul.f32 %v154_v13, %v72_v21 }
  0x3d   :  { %v56_v19 = vrot.slane %v55_v17, 2 }
  0x3f   :  { %v57_v20 = vadd.f32 %v56_v19, %v55_v17 }
  0x41   :  { %v58_v23 = vrot.slane %v57_v20, 1 }
  0x43   :  { %v59_v24 = vadd.f32 %v58_v23, %v57_v20 }
  0x44   :  { %v156_v26 = vpop.eup %155 }
  0x45   :  { %v60_v28 = vmul.f32 0.14285715, %v59_v24  ;;  %v70_v29 = vmul.f32 0.6931472, %v156_v26 }
  0x47   :  { %v76_v30 = vsel %vm75_vm0, %v73_v25, %v70_v29  ;;  %v80_v31 = vadd.f32 1e-05, %v60_v28  ;;  %v106_v42 = vmul.f32 0.1, %v60_v28 }
  0x48   :  { %v77_v32 = vadd.f32 %v76_v30, %v61_v27 }
  0x49   :  { %157 = vrsqrt.f32 %v80_v31  ;;  %v107_v50 = vadd.f32 %v106_v42, %v105_v41 }
  0x4a   :  { %v78_v33 = vsel %vm62_vm1, %v40_v1, %v77_v32  ;;  %159 = vlog2.f32 %v80_v31 }
  0x4b   :  { %v79_v35 = vadd.f32 1e-05, %v78_v33  ;;  %v112_v59 = vrot.slane %v107_v50, 6 }
  0x4d   :  { %161 = vlog2.f32 %v79_v35 }
  0x53   :  { %v158_v44 = vpop.eup %157 }
  0x54   :  { %v160_v45 = vpop.eup %159  ;;  %v82_v46 = vmul.f32 %v158_v44, %v79_v35 }
  0x55   :  { %v99_v49 = vmul.f32 0.6931472, %v160_v45 }
  0x56   :  { %v83_v51 = vmul.f32 %v82_v46, %v51_v11  ;;  %v88_v52 = vrot.slane %v82_v46, %v87_v43 }
  0x57   :  { %v162_v53 = vpop.eup %161  ;;  %v100_v54 = vmul.f32 0.5, %v99_v49 }
  0x58   :  { %v84_v55 = vsub.f32 %v41_v48, %v83_v51  ;;  %v89_v56 = vmul.f32 %v88_v52, %v307_v0  ;;  %v97_v57 = vmul.f32 0.6931472, %v162_v53 }
  0x5a   :  { %v93_v60 = vrot.slane %v84_v55, %v87_v43  ;;  %v101_v61 = vsub.f32 %v97_v57, %v100_v54 }
  0x5c   :  { %v94_v62 = vadd.f32 %v93_v60, %v89_v56  ;;  %v115_v63 = vsel %vm114_vm2, %v101_v61, %v109_v58 }
  0x5d   :  { %v117_v1 = vsel %vm116_vm3, %v115_v63, %v112_v59 }
  0x5e   :  { %95 = vst [vmem:[#allocation7] sm:$0xff] %v94_v62  ;;  %118 = vst [vmem:[#allocation8] sm:$0x7] %v117_v1 }
  0x5f   :  { %218 = shalt.err (!%p215_p6)
}
  0x60   :  { %s219_s14 = scalar_lea.hbm %s339_s2, 128 }
  0x61   :  { %p220_p7 = scmp.ne.s32.totalorder %s339_s2, %s219_s14  ;;  %p223_p8 = scmp.lt.u32.totalorder %s219_s14, %s339_s2 }
  0x63   :  { %p225_p9 = pnand %p223_p8, %p220_p7 }
  0x65   :  { %228 = shalt.err (!%p225_p9)
}
  0x66   :  { %128 = dma.vmem_to_hbm [thread:$0]  %s126_s8, 128, %s339_s2, [#allocation4]  }
  0x67   :  { %s229_s21 = scalar_lea.vmem %s136_s10, 64  ;;  %p234_p11 = scmp.lt.s32.totalorder %s136_s10, %s136_s10 }
  0x68   :  { %p230_p10 = scmp.ne.s32.totalorder %s136_s10, %s229_s21  ;;  %p235_p12 = scmp.lt.s32.totalorder %s229_s21, %s229_s21 }
  0x6a   :  { %p236_p13 = por %p235_p12, %p234_p11 }
  0x6c   :  { %p237_p0 = pnand %p236_p13, %p230_p10 }
  0x6e   :  { %240 = shalt.err (!%p237_p0)
}
  0x6f   :  { %s241_s24 = scalar_lea.hbm %s340_s3, 64 }
  0x70   :  { %p242_p1 = scmp.ne.s32.totalorder %s340_s3, %s241_s24  ;;  %p245_p2 = scmp.lt.u32.totalorder %s241_s24, %s340_s3 }
  0x72   :  { %p247_p3 = pnand %p245_p2, %p242_p1 }
  0x74   :  { %250 = shalt.err (!%p247_p3)
}
  0x75   :  { %138 = dma.vmem_to_hbm [thread:$0]  %s136_s10, 64, %s340_s3, [#allocation9]  }
  0x76   :  { %255 = dma.done.wait [#allocation4], 128  }
  0x77   :  { %256 = vsyncadd [#allocation4], 4294967168 }
  0x78   :  { %257 = dma.done.wait [#allocation9], 64  }
  0x79   :  { %258 = vsyncadd [#allocation9], 4294967232 }
  0x7a   :  { %145 = vsyncpa [#allocation3], 1 }
  0x7b   :  { %146 = vsyncpa [#allocation6], 1 }
  0x7c   :  { %147 = vsyncpa [#allocation4], 1 }
  0x7d   :  { %148 = vsyncpa [#allocation9], 1 }

</bundles_post_ra>
